<compile_context>
chip_gen: v7x
topology: tpu7x:2x2x1
jax: 0.10.0
libtpu: 0.0.40
codegen_flags: <defaults>
</compile_context>

<pallas_src>
import jax
import jax.numpy as jnp
from jax import lax
from jax.experimental import pallas as pl
from jax.experimental.pallas import tpu as pltpu

BIT_WIDTH = 6
BN_EPS = 1e-5
_LANE = 128
_QMAX = float(2 ** (BIT_WIDTH - 1) - 1)   # 31
_QMIN = float(-(2 ** (BIT_WIDTH - 1)))    # -32


def _round_up(x, m):
    return (x + m - 1) // m * m


def _qbn_kernel_resident(x_ref, gamma_ref, beta_ref, o_ref, scale_ref,
                         max_ref, y_ref):
    """Fast path: x fits VMEM -> stage y in scratch, read x from HBM once."""
    p = pl.program_id(0)   # 0 = stats pass, 1 = quantize/apply pass
    j = pl.program_id(1)   # feature-tile index

    @pl.when(p == 0)
    def _stats_pass():
        @pl.when(j == 0)
        def _init():
            max_ref[...] = jnp.zeros_like(max_ref)

        x = x_ref[...].astype(jnp.float32)                       # (N, Ct)
        inv_n = jnp.float32(1.0 / x.shape[0])
        mean = jnp.sum(x, axis=0, keepdims=True) * inv_n          # (1, Ct)
        ex2 = jnp.sum(x * x, axis=0, keepdims=True) * inv_n       # (1, Ct)
        var = jnp.maximum(ex2 - mean * mean, 0.0)                 # clamp fp cancellation
        inv_std = lax.rsqrt(var + jnp.float32(BN_EPS))
        a = inv_std * gamma_ref[...].astype(jnp.float32)          # (1, Ct)
        b = beta_ref[...].astype(jnp.float32) - mean * a          # (1, Ct)
        y = x * a + b
        y_ref[j] = y                                              # stays resident in VMEM
        max_ref[...] = jnp.maximum(max_ref[...],
                                   jnp.max(jnp.abs(y), keepdims=True))

    @pl.when(p == 1)
    def _apply_pass():
        m = jnp.maximum(max_ref[...], jnp.float32(1e-8))          # (1,1)
        scale = m / jnp.float32(_QMAX)
        inv_scale = jnp.float32(_QMAX) / m                        # hoisted divide
        y = y_ref[j]                                              # no HBM re-read of x
        q = jnp.clip(jnp.round(y * inv_scale),
                     jnp.float32(_QMIN), jnp.float32(_QMAX))
        o_ref[...] = (q * scale).astype(o_ref.dtype)
        scale_ref[...] = scale


def _qbn_kernel_stream(x_ref, gamma_ref, beta_ref, o_ref, scale_ref,
                       a_ref, b_ref, max_ref):
    """Fallback: x too large for VMEM -> cache (a, b), re-read x in phase 1."""
    p = pl.program_id(0)
    j = pl.program_id(1)

    @pl.when(p == 0)
    def _stats_pass():
        @pl.when(j == 0)
        def _init():
            max_ref[...] = jnp.zeros_like(max_ref)

        x = x_ref[...].astype(jnp.float32)                        # (N, Ct)
        inv_n = jnp.float32(1.0 / x.shape[0])
        mean = jnp.sum(x, axis=0, keepdims=True) * inv_n
        ex2 = jnp.sum(x * x, axis=0, keepdims=True) * inv_n
        var = jnp.maximum(ex2 - mean * mean, 0.0)
        inv_std = lax.rsqrt(var + jnp.float32(BN_EPS))
        a = inv_std * gamma_ref[...].astype(jnp.float32)          # (1, Ct)
        b = beta_ref[...].astype(jnp.float32) - mean * a          # (1, Ct)
        a_ref[pl.ds(j, 1), :] = a
        b_ref[pl.ds(j, 1), :] = b
        # y = a*x + b is (monotone) affine in x, so the batch extremes of y are
        # attained at the batch extremes of x: no second elementwise pass over
        # the tile is needed to get max|y|.
        xmin = jnp.min(x, axis=0, keepdims=True)
        xmax = jnp.max(x, axis=0, keepdims=True)
        ymax_abs = jnp.maximum(jnp.abs(a * xmin + b), jnp.abs(a * xmax + b))
        max_ref[...] = jnp.maximum(max_ref[...],
                                   jnp.max(ymax_abs, keepdims=True))

    @pl.when(p == 1)
    def _apply_pass():
        m = jnp.maximum(max_ref[...], jnp.float32(1e-8))
        scale = m / jnp.float32(_QMAX)
        inv_scale = jnp.float32(_QMAX) / m                        # hoisted divide
        x = x_ref[...].astype(jnp.float32)
        y = x * a_ref[pl.ds(j, 1), :] + b_ref[pl.ds(j, 1), :]
        q = jnp.clip(jnp.round(y * inv_scale),
                     jnp.float32(_QMIN), jnp.float32(_QMAX))
        o_ref[...] = (q * scale).astype(o_ref.dtype)
        scale_ref[...] = scale


def quant_batchnorm1d(x, gamma, beta, *, block_c=None, force_streaming=False):
    """x: (N, C) float; gamma, beta: (C,) float. Returns (value (N,C), scale (1,1))."""
    n, c = x.shape
    n8 = _round_up(max(n, 1), 8)   # sublane-padded batch extent (VMEM footprint)

    # --- generation-aware budgets (v7x: 64 MiB VMEM, v5e/v6e: 128 MiB) -------
    try:
        vmem_cap = int(pltpu.get_tpu_info().vmem_capacity_bytes)
    except Exception:
        vmem_cap = 128 << 20
    limit_cap = max(16 << 20, min(vmem_cap - (24 << 20), 96 << 20))  # ~40 MiB v7x, 96 MiB v5e/v6e
    resident_budget = (vmem_cap * 3) // 8                            # ~24 MiB v7x, ~48 MiB v5e/v6e
    tile_target = max(2 << 20, min(8 << 20, vmem_cap // 16))         # 4 MiB v7x, 8 MiB v5e/v6e

    c128 = _round_up(c, _LANE)
    if block_c is None:
        # Byte-targeted tile: as many lanes as fit ~tile_target bytes of fp32 x.
        block_c = max(_LANE, min(c128, (tile_target // (n8 * 4)) // _LANE * _LANE))
        # Shrink if double-buffered x+out tiles alone would not fit the budget.
        while block_c > _LANE and 4 * n8 * block_c * 4 + (4 << 20) > limit_cap:
            block_c -= _LANE
    assert block_c % _LANE == 0, "feature tile must be lane-dense (multiple of 128)"

    c_pad = _round_up(c, block_c)
    num_tiles = c_pad // block_c

    if c_pad != c:
        # Padded features: x=0 -> mean=0, var=0, y=0, so they don't perturb the
        # per-tensor max|y|; gamma padded with 1, beta with 0.
        x = jnp.pad(x, ((0, 0), (0, c_pad - c)))
        gamma = jnp.pad(gamma, (0, c_pad - c), constant_values=1.0)
        beta = jnp.pad(beta, (0, c_pad - c))
    gamma2d = gamma.reshape(1, c_pad)
    beta2d = beta.reshape(1, c_pad)

    # --- VMEM accounting ------------------------------------------------------
    tile_bytes = n8 * block_c * 4
    gb_bytes = 2 * 2 * 8 * block_c * 4                 # gamma/beta, double-buffered
    misc = 1 << 20
    resident_bytes = num_tiles * n8 * block_c * 4      # persistent y cache
    ab_bytes = 2 * _round_up(num_tiles, 8) * block_c * 4

    need_resident = resident_bytes + 4 * tile_bytes + gb_bytes + misc
    resident = (not force_streaming
                and resident_bytes <= resident_budget
                and need_resident <= limit_cap)

    if resident:
        kernel = _qbn_kernel_resident
        scratch = [
            pltpu.VMEM((1, 1), jnp.float32),                    # running max|y|
            pltpu.VMEM((num_tiles, n, block_c), jnp.float32),   # resident y cache
        ]
        vmem_need = need_resident
        # Phase 1 reads y from VMEM; pin x on its last phase-0 block so no x
        # DMA is issued during phase 1 at all.
        x_map = lambda p, j: (0, (1 - p) * j + p * (num_tiles - 1))
    else:
        kernel = _qbn_kernel_stream
        scratch = [
            pltpu.VMEM((num_tiles, block_c), jnp.float32),      # a = inv_std*gamma
            pltpu.VMEM((num_tiles, block_c), jnp.float32),      # b = beta - mean*a
            pltpu.VMEM((1, 1), jnp.float32),                    # running max|y|
        ]
        vmem_need = ab_bytes + 4 * tile_bytes + gb_bytes + misc
        x_map = lambda p, j: (0, j)                             # re-read x in phase 1
    # gamma/beta are only used in phase 0; pin them on their last phase-0 block
    # during phase 1 so no re-fetch DMAs are issued.
    gb_map = lambda p, j: (0, (1 - p) * j + p * (num_tiles - 1))

    vmem_limit = int(max(16 << 20, min(vmem_need + (2 << 20), limit_cap)))

    out_val, out_scale = pl.pallas_call(
        kernel,
        out_shape=(
            jax.ShapeDtypeStruct((n, c_pad), x.dtype),
            jax.ShapeDtypeStruct((1, 1), jnp.float32),
        ),
        grid=(2, num_tiles),
        in_specs=[
            pl.BlockSpec((n, block_c), x_map),
            pl.BlockSpec((1, block_c), gb_map),
            pl.BlockSpec((1, block_c), gb_map),
        ],
        out_specs=(
            # Phase 0 (p=0) keeps the output pinned on block 0 and never writes
            # it (no index change => no garbage flush); phase 1 writes each
            # block exactly once.
            pl.BlockSpec((n, block_c), lambda p, j: (0, p * j)),
            # Constant index -> the (1,1) scale is flushed to HBM once at grid end.
            pl.BlockSpec((1, 1), lambda p, j: (0, 0)),
        ),
        scratch_shapes=scratch,
        compiler_params=pltpu.CompilerParams(
            # Running max|y| and the phase ordering carry state across grid
            # steps, so both axes must stay sequential in this fused design.
            dimension_semantics=("arbitrary", "arbitrary"),
            vmem_limit_bytes=vmem_limit,
        ),
    )(x, gamma2d, beta2d)

    return out_val[:, :c], out_scale


def _reference(x, gamma, beta):
    # Same math as the kernel (biased variance, fused affine, hoisted reciprocal).
    inv_n = 1.0 / x.shape[0]
    mean = jnp.sum(x, axis=0, keepdims=True) * inv_n
    var = jnp.maximum(jnp.sum(x * x, axis=0, keepdims=True) * inv_n - mean * mean, 0.0)
    a = lax.rsqrt(var + BN_EPS) * gamma[None, :]
    b = beta[None, :] - mean * a
    y = x * a + b
    m = jnp.maximum(jnp.max(jnp.abs(y)), 1e-8)
    scale = m / _QMAX
    inv_scale = _QMAX / m
    q = jnp.clip(jnp.round(y * inv_scale), _QMIN, _QMAX)
    return q * scale, scale


if __name__ == "__main__":
    key = jax.random.PRNGKey(0)
    k1, k2, k3, k4 = jax.random.split(key, 4)

    # Case 1: multi-tile grid (3 feature tiles of 128), VMEM-resident fast path.
    N1, C1 = 8, 384
    x1 = jax.random.normal(k1, (N1, C1), dtype=jnp.float32) * 3.0 + 0.5
    g1 = 1.0 + 0.1 * jax.random.normal(k3, (C1,), dtype=jnp.float32)
    b1 = 0.05 * jax.random.normal(k4, (C1,), dtype=jnp.float32)
    v1, s1 = quant_batchnorm1d(x1, g1, b1, block_c=128)
    jax.block_until_ready(v1)
    jax.block_until_ready(s1)
    rv1, rs1 = _reference(x1, g1, b1)
    assert jnp.allclose(v1, rv1, atol=1e-4, rtol=1e-4), "value mismatch (case 1)"
    assert jnp.allclose(s1[0, 0], rs1, atol=1e-5, rtol=1e-5), "scale mismatch (case 1)"

    # Case 2: non-multiple-of-128 feature count -> lane padding, auto tile size.
    N2, C2 = 16, 200
    x2 = jax.random.normal(k2, (N2, C2), dtype=jnp.float32) * 2.0 - 0.3
    g2 = jnp.ones((C2,), dtype=jnp.float32)   # BatchNorm1d init: gamma=1, beta=0
    b2 = jnp.zeros((C2,), dtype=jnp.float32)
    v2, s2 = quant_batchnorm1d(x2, g2, b2)
    jax.block_until_ready(v2)
    jax.block_until_ready(s2)
    rv2, rs2 = _reference(x2, g2, b2)
    assert jnp.allclose(v2, rv2, atol=1e-4, rtol=1e-4), "value mismatch (case 2)"
    assert jnp.allclose(s2[0, 0], rs2, atol=1e-5, rtol=1e-5), "scale mismatch (case 2)"

    # Case 3: force the streaming (non-resident) fallback path.
    v3, s3 = quant_batchnorm1d(x1, g1, b1, block_c=128, force_streaming=True)
    jax.block_until_ready(v3)
    jax.block_until_ready(s3)
    assert jnp.allclose(v3, rv1, atol=1e-4, rtol=1e-4), "value mismatch (case 3)"
    assert jnp.allclose(s3[0, 0], rs1, atol=1e-5, rtol=1e-5), "scale mismatch (case 3)"

    print("KERNEL_OK")
</pallas_src>

<mosaic_0001>
module attributes {stable_mosaic.version = 11 : i64} {
  func.func @_qbn_kernel_resident(%arg0: i32, %arg1: i32, %arg2: memref<8x128xf32, #tpu.memory_space<vmem>>, %arg3: memref<1x128xf32, #tpu.memory_space<vmem>>, %arg4: memref<1x128xf32, #tpu.memory_space<vmem>>, %arg5: memref<8x128xf32, #tpu.memory_space<vmem>>, %arg6: memref<1x1xf32, #tpu.memory_space<vmem>>, %arg7: memref<1x1xf32, #tpu.memory_space<vmem>>, %arg8: memref<3x8x128xf32, #tpu.memory_space<vmem>>) attributes {dimension_semantics = [#tpu.dimension_semantics<arbitrary>, #tpu.dimension_semantics<arbitrary>], iteration_bounds = array<i64: 2, 3>, scalar_prefetch = 0 : i64, scratch_operands = 2 : i64, tpu.core_type = #tpu.core_type<tc>, window_params = [{transform_indices = @transform_0, window_bounds = array<i64: 8, 128>}, {transform_indices = @transform_1, window_bounds = array<i64: 1, 128>}, {transform_indices = @transform_2, window_bounds = array<i64: 1, 128>}, {transform_indices = @transform_3, window_bounds = array<i64: 8, 128>}, {pipeline_mode = #tpu.pipeline_mode<synchronous>, transform_indices = @transform_4, window_bounds = array<i64: 1, 1>}]} {
    %c0_i32 = arith.constant 0 : i32
    %0 = arith.cmpi eq, %arg0, %c0_i32 : i32
    %1 = arith.extui %0 : i1 to i32
    %c0_i32_0 = arith.constant 0 : i32
    %2 = arith.cmpi ne, %1, %c0_i32_0 : i32
    scf.if %2 {
      %c0_i32_2 = arith.constant 0 : i32
      %6 = arith.cmpi eq, %arg1, %c0_i32_2 : i32
      %7 = arith.extui %6 : i1 to i32
      %c0_i32_3 = arith.constant 0 : i32
      %8 = arith.cmpi ne, %7, %c0_i32_3 : i32
      scf.if %8 {
        %cst_21 = arith.constant 0.000000e+00 : f32
        %48 = vector.broadcast %cst_21 : f32 to vector<1x1xf32>
        %c0_22 = arith.constant 0 : index
        %c0_23 = arith.constant 0 : index
        %49 = vector.load %arg7[%c0_22, %c0_23] : memref<1x1xf32, #tpu.memory_space<vmem>>, vector<1x1xf32>
        tpu.vector_store %arg7[%c0_22, %c0_23], %48 {strides = array<i32>} : memref<1x1xf32, #tpu.memory_space<vmem>>, vector<1x1xf32>,
      } else {
      }
      %c0 = arith.constant 0 : index
      %c0_4 = arith.constant 0 : index
      %9 = vector.load %arg2[%c0, %c0_4] : memref<8x128xf32, #tpu.memory_space<vmem>>, vector<8x128xf32>
      %cst = arith.constant dense<0.000000e+00> : vector<128xf32>
      %10 = vector.multi_reduction <add>, %9, %cst [0] : vector<8x128xf32> to vector<128xf32>
      %11 = vector.shape_cast %10 : vector<128xf32> to vector<1x128xf32>
      %cst_5 = arith.constant 1.250000e-01 : f32
      %12 = vector.broadcast %cst_5 : f32 to vector<1x128xf32>
      %13 = arith.mulf %11, %12 : vector<1x128xf32>
      %14 = arith.mulf %9, %9 : vector<8x128xf32>
      %cst_6 = arith.constant dense<0.000000e+00> : vector<128xf32>
      %15 = vector.multi_reduction <add>, %14, %cst_6 [0] : vector<8x128xf32> to vector<128xf32>
      %16 = vector.shape_cast %15 : vector<128xf32> to vector<1x128xf32>
      %cst_7 = arith.constant 1.250000e-01 : f32
      %17 = vector.broadcast %cst_7 : f32 to vector<1x128xf32>
      %18 = arith.mulf %16, %17 : vector<1x128xf32>
      %19 = arith.mulf %13, %13 : vector<1x128xf32>
      %20 = arith.subf %18, %19 : vector<1x128xf32>
      %cst_8 = arith.constant 0.000000e+00 : f32
      %21 = vector.broadcast %cst_8 : f32 to vector<1x128xf32>
      %22 = arith.maximumf %20, %21 : vector<1x128xf32>
      %cst_9 = arith.constant 9.99999974E-6 : f32
      %23 = vector.broadcast %cst_9 : f32 to vector<1x128xf32>
      %24 = arith.addf %22, %23 : vector<1x128xf32>
      %25 = math.rsqrt %24 : vector<1x128xf32>
      %c0_10 = arith.constant 0 : index
      %c0_11 = arith.constant 0 : index
      %26 = vector.load %arg3[%c0_10, %c0_11] : memref<1x128xf32, #tpu.memory_space<vmem>>, vector<1x128xf32>
      %27 = arith.mulf %25, %26 : vector<1x128xf32>
      %c0_12 = arith.constant 0 : index
      %c0_13 = arith.constant 0 : index
      %28 = vector.load %arg4[%c0_12, %c0_13] : memref<1x128xf32, #tpu.memory_space<vmem>>, vector<1x128xf32>
      %29 = arith.mulf %13, %27 : vector<1x128xf32>
      %30 = arith.subf %28, %29 : vector<1x128xf32>
      %31 = vector.broadcast %27 : vector<1x128xf32> to vector<8x128xf32>
      %32 = arith.mulf %9, %31 : vector<8x128xf32>
      %33 = vector.broadcast %30 : vector<1x128xf32> to vector<8x128xf32>
      %34 = arith.addf %32, %33 : vector<8x128xf32>
      %35 = arith.index_cast %arg1 : i32 to index
      %c0_14 = arith.constant 0 : index
      %c0_15 = arith.constant 0 : index
      %36 = vector.load %arg8[%35, %c0_14, %c0_15] : memref<3x8x128xf32, #tpu.memory_space<vmem>>, vector<1x8x128xf32>
      %37 = vector.shape_cast %36 : vector<1x8x128xf32> to vector<8x128xf32>
      %38 = vector.shape_cast %34 : vector<8x128xf32> to vector<1x8x128xf32>
      tpu.vector_store %arg8[%35, %c0_14, %c0_15], %38 {strides = array<i32>} : memref<3x8x128xf32, #tpu.memory_space<vmem>>, vector<1x8x128xf32>,
      %c0_16 = arith.constant 0 : index
      %c0_17 = arith.constant 0 : index
      %39 = vector.load %arg7[%c0_16, %c0_17] : memref<1x1xf32, #tpu.memory_space<vmem>>, vector<1x1xf32>
      %40 = math.absf %34 : vector<8x128xf32>
      %41 = vector.shape_cast %40 : vector<8x128xf32> to vector<1x8x128xf32>
      %cst_18 = arith.constant dense<0xFF800000> : vector<1xf32>
      %42 = vector.multi_reduction <maximumf>, %41, %cst_18 [1, 2] : vector<1x8x128xf32> to vector<1xf32>
      %43 = vector.shape_cast %42 : vector<1xf32> to vector<1x1x1xf32>
      %44 = vector.extract %43[0, 0, 0] : f32 from vector<1x1x1xf32>
      %45 = vector.broadcast %44 : f32 to vector<1x1xf32>
      %46 = arith.maximumf %39, %45 : vector<1x1xf32>
      %c0_19 = arith.constant 0 : index
      %c0_20 = arith.constant 0 : index
      %47 = vector.load %arg7[%c0_19, %c0_20] : memref<1x1xf32, #tpu.memory_space<vmem>>, vector<1x1xf32>
      tpu.vector_store %arg7[%c0_19, %c0_20], %46 {strides = array<i32>} : memref<1x1xf32, #tpu.memory_space<vmem>>, vector<1x1xf32>,
    } else {
    }
    %c1_i32 = arith.constant 1 : i32
    %3 = arith.cmpi eq, %arg0, %c1_i32 : i32
    %4 = arith.extui %3 : i1 to i32
    %c0_i32_1 = arith.constant 0 : i32
    %5 = arith.cmpi ne, %4, %c0_i32_1 : i32
    scf.if %5 {
      %c0 = arith.constant 0 : index
      %c0_2 = arith.constant 0 : index
      %6 = vector.load %arg7[%c0, %c0_2] : memref<1x1xf32, #tpu.memory_space<vmem>>, vector<1x1xf32>
      %cst = arith.constant 9.99999993E-9 : f32
      %7 = vector.broadcast %cst : f32 to vector<1x1xf32>
      %8 = arith.maximumf %6, %7 : vector<1x1xf32>
      %cst_3 = arith.constant 3.100000e+01 : f32
      %9 = vector.broadcast %cst_3 : f32 to vector<1x1xf32>
      %10 = arith.divf %8, %9 : vector<1x1xf32>
      %cst_4 = arith.constant 3.100000e+01 : f32
      %11 = vector.broadcast %cst_4 : f32 to vector<1x1xf32>
      %12 = arith.divf %11, %8 : vector<1x1xf32>
      %13 = arith.index_cast %arg1 : i32 to index
      %c0_5 = arith.constant 0 : index
      %c0_6 = arith.constant 0 : index
      %14 = vector.load %arg8[%13, %c0_5, %c0_6] : memref<3x8x128xf32, #tpu.memory_space<vmem>>, vector<1x8x128xf32>
      %15 = vector.shape_cast %14 : vector<1x8x128xf32> to vector<8x128xf32>
      %16 = vector.broadcast %12 : vector<1x1xf32> to vector<8x128xf32>
      %17 = arith.mulf %15, %16 : vector<8x128xf32>
      %18 = math.roundeven %17 : vector<8x128xf32>
      %cst_7 = arith.constant -3.200000e+01 : f32
      %cst_8 = arith.constant 3.100000e+01 : f32
      %19 = vector.broadcast %cst_7 : f32 to vector<8x128xf32>
      %20 = arith.maximumf %19, %18 : vector<8x128xf32>
      %21 = vector.broadcast %cst_8 : f32 to vector<8x128xf32>
      %22 = arith.minimumf %21, %20 : vector<8x128xf32>
      %23 = vector.broadcast %10 : vector<1x1xf32> to vector<8x128xf32>
      %24 = arith.mulf %22, %23 : vector<8x128xf32>
      %c0_9 = arith.constant 0 : index
      %c0_10 = arith.constant 0 : index
      %25 = vector.load %arg5[%c0_9, %c0_10] : memref<8x128xf32, #tpu.memory_space<vmem>>, vector<8x128xf32>
      tpu.vector_store %arg5[%c0_9, %c0_10], %24 {strides = array<i32>} : memref<8x128xf32, #tpu.memory_space<vmem>>, vector<8x128xf32>,
      %c0_11 = arith.constant 0 : index
      %c0_12 = arith.constant 0 : index
      %26 = vector.load %arg6[%c0_11, %c0_12] : memref<1x1xf32, #tpu.memory_space<vmem>>, vector<1x1xf32>
      tpu.vector_store %arg6[%c0_11, %c0_12], %10 {strides = array<i32>} : memref<1x1xf32, #tpu.memory_space<vmem>>, vector<1x1xf32>,
    } else {
    }
    return
  }
  func.func @transform_0(%arg0: i32, %arg1: i32) -> (i32, i32) {
    %c1_i32 = arith.constant 1 : i32
    %0 = arith.subi %c1_i32, %arg0 : i32
    %1 = arith.muli %0, %arg1 : i32
    %c2_i32 = arith.constant 2 : i32
    %2 = arith.muli %arg0, %c2_i32 : i32
    %3 = arith.addi %1, %2 : i32
    %c0_i32 = arith.constant 0 : i32
    %c0_i32_0 = arith.constant 0 : i32
    return %c0_i32, %3 : i32, i32
  }
  func.func @transform_1(%arg0: i32, %arg1: i32) -> (i32, i32) {
    %c1_i32 = arith.constant 1 : i32
    %0 = arith.subi %c1_i32, %arg0 : i32
    %1 = arith.muli %0, %arg1 : i32
    %c2_i32 = arith.constant 2 : i32
    %2 = arith.muli %arg0, %c2_i32 : i32
    %3 = arith.addi %1, %2 : i32
    %c0_i32 = arith.constant 0 : i32
    %c0_i32_0 = arith.constant 0 : i32
    return %c0_i32, %3 : i32, i32
  }
  func.func @transform_2(%arg0: i32, %arg1: i32) -> (i32, i32) {
    %c1_i32 = arith.constant 1 : i32
    %0 = arith.subi %c1_i32, %arg0 : i32
    %1 = arith.muli %0, %arg1 : i32
    %c2_i32 = arith.constant 2 : i32
    %2 = arith.muli %arg0, %c2_i32 : i32
    %3 = arith.addi %1, %2 : i32
    %c0_i32 = arith.constant 0 : i32
    %c0_i32_0 = arith.constant 0 : i32
    return %c0_i32, %3 : i32, i32
  }
  func.func @transform_3(%arg0: i32, %arg1: i32) -> (i32, i32) {
    %0 = arith.muli %arg0, %arg1 : i32
    %c0_i32 = arith.constant 0 : i32
    %c0_i32_0 = arith.constant 0 : i32
    return %c0_i32, %0 : i32, i32
  }
  func.func @transform_4(%arg0: i32, %arg1: i32) -> (i32, i32) {
    %c0_i32 = arith.constant 0 : i32
    %c0_i32_0 = arith.constant 0 : i32
    %c0_i32_1 = arith.constant 0 : i32
    return %c0_i32, %c0_i32_0 : i32, i32
  }
}

</mosaic_0001>

<bundles_post_ra>
// kernel: tpu_custom_call.1
= control target key start
LH: loop header
LB: loop body
LE: loop exit
PB: predicated region body
PF: predicated region fallthrough
CT: control target
= control target key end

     0   :  { %s1232_s0 = inlined_call_operand.hbm [shape: f32[8,384], index: 0, kind: input, shape index: {}]   ;;  %s1233_s1 = inlined_call_operand.vmem [shape: f32[1,384], index: 1, kind: input, shape index: {}]   ;;  %s1234_s2 = inlined_call_operand.vmem [shape: f32[1,384], index: 2, kind: input, shape index: {}]   ;;  %s1235_s3 = inlined_call_operand.hbm [shape: f32[8,384], index: 3, kind: output, shape index: {0}]   ;;  %s1236_s4 = inlined_call_operand.hbm [shape: f32[1,1], index: 4, kind: output, shape index: {1}]  }
   0x1   :  { %1244 = sst [smem:[#allocation16_spill]] %s1232_s0 }
   0x2   :  { %1245 = sst [smem:[#allocation17_spill]] %s1236_s4 }
   0x3   :  { %10 = vsyncpa [#allocation5], 0 }
   0x4   :  { %12 = vsyncpa [#allocation5 + $0x1], 0 }
   0x5   :  { %13 = vsyncpa [#allocation6], 0 }
   0x6   :  { %15 = vsyncpa [#allocation6 + $0x1], 0 }
   0x7   :  { %16 = vsyncpa [#allocation9], 0  ;;  %s936_s15 = smov 0   ;;  %s938_s16 = smov 0  }
   0x8   :  { %s940_s17 = smov 0   ;;  %s942_s18 = smov 0  }
   0x9   :  { %s944_s19 = smov 0   ;;  %s946_s20 = smov 0  }
   0xa   :  { %s948_s21 = smov 0   ;;  %s950_s22 = smov 0  }
   0xb   :  { %s952_s23 = smov 0   ;;  %s954_s24 = smov 0  }
   0xc   :  { %s956_s25 = smov 0  }
   0xd LB: > { %1246 = sst [smem:[#allocation13_spill]] %s900_s24  ;;  %s574_s26 = sadd.s32 4294967295, %s904_s25   ;;  %s904_s25 = sphi %s956_s25, %s22_s25   ;;  %s900_s24 = sphi %s954_s24, %s1274_s24   ;;  %s896_s23 = sphi %s952_s23, %s1273_s23   ;;  %s892_s22 = sphi %s950_s22, %s1263_s22   ;;  %s888_s21 = sphi %s948_s21, %s1272_s21   ;;  %s884_s20 = sphi %s946_s20, %s1271_s20   ;;  %s880_s19 = sphi %s944_s19, %s1270_s19   ;;  %s876_s18 = sphi %s942_s18, %s1269_s18   ;;  %s872_s17 = sphi %s940_s17, %s1268_s17   ;;  %s868_s16 = sphi %s938_s16, %s1267_s16   ;;  %s864_s15 = sphi %s936_s15, %s1266_s15  }
   0xe   : > { %s31_s28 = sadd.s32 1, %s896_s23  ;;  %s34_s29 = sadd.s32 1, %s900_s24 }
   0xf   : > { %p32_p0 = scmp.ge.s32.totalorder %s31_s28, 3  ;;  %s38_s30 = ssub.s32 1, %s900_s24 }
  0x10   : > { %s39_s5 = smul.u32 %s896_s23, %s38_s30  ;;  %s576_s6 = sshll.u32 %s900_s24, 1 }
  0x11   : > { %s1276_s28 = smov (%p32_p0, %s31_s28), 0  ;;  %s1278_s29 = smov (!%p32_p0, %s34_s29), %s900_s24 }
  0x12   : > { %1247 = sst [smem:[#allocation14_spill]] %s1276_s28  ;;  %s1001_s7 = sadd.s32 %s576_s6, %s39_s5 }
  0x13   : > { %s49_s8 = sadd.s32 1, %s884_s20  ;;  %p36_p1 = scmp.ge.s32.totalorder %s1278_s29, 2 }
  0x14   : > { %p56_p2 = scmp.ne.s32.totalorder %s884_s20, %s880_s19  ;;  %p57_p3 = scmp.eq.s32.totalorder %s904_s25, 0 }
  0x15   : > { %p62_p4 = scmp.ne.s32.totalorder %s880_s19, %s876_s18  ;;  %s1280_s29 = smov (%p36_p1, %s1278_s29), 0 }
  0x16   : > { %1248 = sst [smem:[#allocation15_spill]] %s1280_s29  ;;  %p1011_p5 = por %p57_p3, %p56_p2 }
  0x17   : > { %p63_p6 = scmp.eq.s32.totalorder %s574_s26, 0  ;;  %s42_s10 = ssub.s32 1, %s1280_s29 }
  0x18   : > { %s577_s11 = sshll.u32 %s1280_s29, 1  ;;  %s43_s12 = smul.u32 %s42_s10, %s1276_s28 }
  0x19   : > { %p1020_p7 = por %p63_p6, %p62_p4  ;;  %s140_s14 = smul.u32 %s896_s23, %s900_s24 }
  0x1a   : > { %s145_s18 = sadd.s32 1, %s872_s17  ;;  %s45_s30 = sadd.s32 %s577_s11, %s43_s12 }
  0x1b   : > { %s141_s5 = smul.u32 %s1280_s29, %s1276_s28  ;;  %s46_s6 = ssub.s32 %s1001_s7, %s45_s30 }
  0x1c   : > { %p155_p8 = scmp.ne.s32.totalorder %s872_s17, %s868_s16  ;;  %p47_p9 = scmp.eq.s32.totalorder %s46_s6, 0 }
  0x1d   : > { %s142_s27 = ssub.s32 %s140_s14, %s141_s5  ;;  %p1034_p11 = scmp.eq.s32.totalorder %s574_s26, 5 }
  0x1e   : > { %p143_p10 = scmp.eq.s32.totalorder %s142_s27, 0  ;;  %p161_p13 = scmp.ne.s32.totalorder %s868_s16, %s864_s15 }
  0x1f   : > { %s1251_s10 = scalar_select %p1034_p11, 1, 0 }
  0x20   : > { %s1039_s4 = scalar_select %p47_p9, %s884_s20, %s49_s8  }
  0x21   : > { %s1042_s24 = scalar_select %p143_p10, %s872_s17, %s145_s18  }
  0x22   : > { %p1046_p12 = por %p1034_p11, %p155_p8  ;;  %s1253_s12 = sadd.s32 4294967294, %s904_s25  }
  0x23   : > { %p162_p0 = scmp.eq.s32.totalorder %s1253_s12, 5  ;;  %p622_p1 = scmp.lt.s32.totalorder %s904_s25, 6 }
  0x24   : > { %s1252_s11 = scalar_select %p1046_p12, 1, 0 }
  0x25   : > { %s203_s26 = sand.u32 1, %s884_s20   ;;  %p1056_p2 = por %p162_p0, %p161_p13 }
  0x26   : > { %s584_s14 = sshll.u32 %s203_s26, 3  ;;  %s586_s8 = sshll.u32 %s1001_s7, 7 }
  0x27   : > { %s1254_s27 = scalar_select %p1056_p2, 1, 0 }
  0x28   : > { %s1255_s0 = sld [smem:[#allocation16_spill]]  ;;  %s207_s6 = scalar_lea.vmem [#allocation4], %s584_s14 }
  0x29   : > { %s218_s29 = sshll.u32 %s207_s6, 4  ;;  %p1068_p3 = pnand %p622_p1, %p1011_p5  ;;  %s1072_s29 = int_to_ptr.vmem [resolvable:$true] %s218_s29 }
  0x2a   : > { %s204_s7 = scalar_lea.sflag [#allocation5], %s203_s26 }
  0x2b   : > { %p724_p9 = pneg %p1068_p3 }
  0x2e   : > { %s1064_s18 = scalar_lea.hbm %s1255_s0, %s586_s8  ;;  %s727_s30 = scalar_lea.hbm %s1255_s0, 384 }
  0x2f   : > { %s722_s8 = scalar_lea.hbm %s1064_s18, 128  ;;  %p728_p5 = scmp.lt.u32.totalorder %s1064_s18, %s1255_s0 }
  0x30   : > { %p723_p8 = scmp.ne.s32.totalorder %s1064_s18, %s722_s8  ;;  %p729_p0 = scmp.lt.u32.totalorder %s727_s30, %s722_s8 }
  0x31   : > { %p731_p4 = scmp.lt.u32.totalorder %s722_s8, %s1064_s18 }
  0x32   : > { %p725_p10 = pnand %p724_p9, %p723_p8  ;;  %p730_p1 = por %p729_p0, %p728_p5 }
  0x34   : > { %p726_p13 = pneg %p725_p10  ;;  %p732_p6 = por %p731_p4, %p730_p1 }
  0x36   : > { %p733_p2 = pnand %p732_p6, %p726_p13 }
  0x38   : > { %736 = shalt.err (!%p733_p2)
}
  0x39   : > { %s737_s26 = scalar_lea.vmem %s1072_s29, 128  ;;  %s906_s9 = smov [#allocation4]  }
  0x3a   : > { %p738_p8 = scmp.ne.s32.totalorder %s1072_s29, %s737_s26  ;;  %s742_s14 = sshll.u32 %s906_s9, 4  ;;  %s743_s14 = int_to_ptr.vmem [resolvable:$false] %s742_s14 }
  0x3b   : > { %s744_s5 = scalar_lea.vmem %s743_s14, 256  ;;  %p745_p12 = scmp.lt.s32.totalorder %s1072_s29, %s743_s14 }
  0x3c   : > { %p740_p10 = pnand %p738_p8, %p724_p9  ;;  %p746_p5 = scmp.lt.s32.totalorder %s744_s5, %s737_s26 }
  0x3e   : > { %p741_p11 = pneg %p740_p10  ;;  %p747_p0 = por %p746_p5, %p745_p12 }
  0x40   : > { %p748_p4 = pnand %p747_p0, %p741_p11 }
  0x42   : > { %751 = shalt.err (!%p748_p4)
}
  0x43   : > { %617 = dma.hbm_to_vmem [thread:$0]  (!%p1068_p3), %s1064_s18, 128, %s1072_s29, %s204_s7  }
  0x44   : > { %p1257_p2 = scmp.lt.s32.totalorder %s904_s25, 7  ;;  %p1258_p6 = scmp.ge.s32.totalorder %s904_s25, 1 }
  0x46   : > { %p252_p9 = pnand %p1258_p6, %p1257_p2 }
  0x47   : > { %s257_s8 = sand.u32 (!%p252_p9), 1, %s880_s19  }
  0x48   : > { %255 = sbr.rel (%p252_p9) target bundleno = 573 (0x23d), region = 32  ;;  %s588_s30 = sshll.u32 (!%p252_p9), %s257_s8, 3 }
  0x49   : > { %s258_s6 = scalar_lea.sflag (!%p252_p9), [#allocation5], %s257_s8  ;;  %s261_s26 = scalar_lea.vmem (!%p252_p9), [#allocation4], %s588_s30 }
  0x4f   : > { %851 = dma.done.wait (%p1020_p7), %s258_s6, 128  }
  0x50   : > { %853 = vsyncadd (%p1020_p7), %s258_s6, 4294967168  ;;  %s295_s29 = sand.u32 1, %s868_s16   ;;  %s304_s18 = ssub.s32 1, %s892_s22 }
  0x51   : > { %s1114_s12 = sshll.u32 %s295_s29, 3  ;;  %s305_s7 = smul.u32 %s888_s21, %s304_s18 }
  0x52   : > { %s590_s9 = sshll.u32 %s892_s22, 1  ;;  %s297_s28 = scalar_lea.vmem [#allocation7], %s1114_s12 }
  0x53   : > { %s307_s14 = sadd.s32 %s590_s9, %s305_s7  ;;  %p592_p7 = scmp.ne.s32.totalorder %s892_s22, 0 }
  0x54   : > { %p308_p11 = scmp.lt.s32.totalorder %s307_s14, 2  ;;  %p593_p12 = scmp.ne.s32.totalorder (!%p592_p7), %s888_s21, 0 }
  0x55   : > { %330 = sbr.rel (%p592_p7) target bundleno = 353 (0x161), region = 40 }
  0x56   : > { %s1282_s14 = smov (!%p308_p11, %s307_s14), 2 }
  0x57   : > { %s310_s8 = scalar_lea.vmem %s1233_s1, %s1282_s14  ;;  %s321_s0 = scalar_lea.vmem %s1234_s2, %s1282_s14 }
  0x5c   : > { %334 = sbr.rel (%p593_p12) target bundleno = 99 (0x63), region = 44  ;;  %vm335_vm0 = vcmask (!%p593_p12), 0   ;;  %v907_v0 = vmov (!%p593_p12), 0.0  }
  0x5d   : > { %336 = vst.msk [vmem:[#allocation2] sm:$0x1] (!%p593_p12), %vm335_vm0, %v907_v0 }
  0x63 PF: > { %v337_v1 = vld [vmem:[%s261_s26] sm:$0xff]  ;;  %v363_v21 = vlaneseq  ;;  %s594_s13 = sshll.u32 %s888_s21, 3  ;;  %vm391_vm1 = vcmask 0  }
  0x64   : > { %v338_v2 = vrot.slane %v337_v1, 4  ;;  %v345_v3 = vmul.f32 %v337_v1, %v337_v1  ;;  %v358_v23 = vld [vmem:[%s310_s8] sm:$0x1]  ;;  %s376_s5 = scalar_lea.vmem [#allocation3], %s594_s13 }
  0x65   : > { %v364_v22 = vshrl.u32 %v363_v21, 7  ;;  %v360_v27 = vld [vmem:[%s321_s0] sm:$0x1] }
  0x66   : > { %v339_v4 = vadd.f32 %v338_v2, %v337_v1  ;;  %v346_v5 = vrot.slane %v345_v3, 4  ;;  %v378_v42 = vld [vmem:[#allocation2] sm:$0x1] }
  0x67   : > { %v365_v24 = vsub.s32 0, %v364_v22 }
  0x68   : > { %v340_v6 = vrot.slane %v339_v4, 2  ;;  %v347_v7 = vadd.f32 %v346_v5, %v345_v3 }
  0x6a   : > { %v341_v8 = vadd.f32 %v340_v6, %v339_v4  ;;  %v348_v9 = vrot.slane %v347_v7, 2 }
  0x6c   : > { %v342_v10 = vrot.slane %v341_v8, 1  ;;  %v349_v11 = vadd.f32 %v348_v9, %v347_v7 }
  0x6e   : > { %v343_v12 = vadd.f32 %v342_v10, %v341_v8  ;;  %v350_v13 = vrot.slane %v349_v11, 1 }
  0x70   : > { %v344_v14 = vmul.f32 0.125, %v343_v12  ;;  %v351_v15 = vadd.f32 %v350_v13, %v349_v11 }
  0x72   : > { %v352_v16 = vmul.f32 0.125, %v351_v15  ;;  %v353_v17 = vmul.f32 %v344_v14, %v344_v14 }
  0x74   : > { %v354_v18 = vsub.f32 %v352_v16, %v353_v17 }
  0x76   : > { %v355_v19 = vmax.f32 %v354_v18, 0.0 }
  0x78   : > { %v356_v20 = vadd.f32 1e-05, %v355_v19 }
  0x7a   : > { %717 = vrsqrt.f32 %v356_v20 }
  0x84   : > { %v718_v25 = vpop.eup %717 }
  0x85   : > { %v359_v26 = vmul.f32 %v718_v25, %v358_v23 }
  0x87   : > { %v361_v28 = vmul.f32 %v359_v26, %v344_v14  ;;  %v366_v29 = vrot.slane %v359_v26, %v365_v24 }
  0x89   : > { %v362_v30 = vsub.f32 %v360_v27, %v361_v28  ;;  %v367_v31 = vmul.f32 %v366_v29, %v337_v1 }
  0x8b   : > { %v372_v32 = vrot.slane %v362_v30, %v365_v24 }
  0x8d   : > { %v374_v33 = vadd.f32 %v372_v32, %v367_v31 }
  0x8f   : > { %377 = vst [vmem:[%s376_s5] sm:$0xff] %v374_v33  ;;  %v379_v34 = vand.u32 2147483647, %v374_v33 }
  0x91   : > { %380 = vmax.xlane.f32.xlu0 %v379_v34 }
 0x11e   : > { %v381_v35 = vpop.xlane.xlu0 %380 }
 0x11f   : > { %v382_v36 = vrot.slane %v381_v35, 4 }
 0x121   : > { %v383_v37 = vmax.f32 %v381_v35, %v382_v36 }
 0x123   : > { %v384_v38 = vrot.slane %v383_v37, 2 }
 0x125   : > { %v385_v39 = vmax.f32 %v383_v37, %v384_v38 }
 0x127   : > { %v386_v40 = vrot.slane %v385_v39, 1 }
 0x129   : > { %v387_v41 = vmax.f32 %v385_v39, %v386_v40 }
 0x12b   : > { %603 = vpush %v387_v41 }
 0x15c   : > { %s604_s0 = spop %603 }
 0x15d   : > { %v389_v43 = vstv %s604_s0 }
 0x15e   : > { %v390_v44 = vmax.f32 %v378_v42, %v389_v43 }
 0x160   : > { %392 = vst.msk [vmem:[#allocation2] sm:$0x1] %vm391_vm1, %v390_v44 }
 0x161 PF: > { %p595_p3 = scmp.ne.s32.totalorder %s892_s22, 1 }
 0x162   : > { %v908_v46 = vmov (!%p595_p3), 0   ;;  %vm430_vm2 = vcmask (!%p595_p3), 0   ;;  %v407_v49 = vlaneseq (!%p595_p3)  ;;  %s596_s14 = sshll.u32 (!%p595_p3), %s888_s21, 3 }
 0x163   : > { %396 = sbr.rel (%p595_p3) target bundleno = 516 (0x204), region = 48  ;;  %719 = vset.pattern.permute.xlu0 (!%p595_p3), %v908_v46  ;;  %s404_s8 = scalar_lea.vmem (!%p595_p3), [#allocation3], %s596_s14 }
 0x164   : > { %v408_v50 = vshrl.u32 (!%p595_p3), %v407_v49, 7  ;;  %v405_v56 = vld [vmem:[%s404_s8] sm:$0xff] (!%p595_p3) }
 0x166   : > { %v409_v51 = vsub.s32 (!%p595_p3), 0, %v408_v50 }
 0x167   : > { %v397_v45 = vld [vmem:[#allocation2] sm:$0x1] (!%p595_p3) }
 0x168   : > { %v398_v47 = vmax.f32 (!%p595_p3), %v397_v45, 1e-08 }
 0x16a   : > { %720 = vrcp.f32 %v398_v47  ;;  %v400_v48 = vmul.f32 0.032258064, %v398_v47 }
 0x16c   : > { %431 = vst.msk [vmem:[#allocation8] sm:$0x1] %vm430_vm2, %v400_v48  ;;  %v423_v55 = vrot.slane %v400_v48, %v409_v51 }
 0x174   : > { %v721_v52 = vpop.eup %720 }
 0x175   : > { %v402_v53 = vmul.f32 31.0, %v721_v52 }
 0x177   : > { %v410_v54 = vrot.slane %v402_v53, %v409_v51 }
 0x179   : > { %412 = vperm.xlu0 %719, %v410_v54  }
 0x17d   : > { %425 = vperm.xlu0 %719, %v423_v55  }
 0x1f8   : > { %v413_v57 = vpop.permute.xlu0 %412 }
 0x1f9   : > { %v415_v58 = vmul.f32 %v413_v57, %v405_v56 }
 0x1fb   : > { %v605_v59 = vround.rtne.f32 %v415_v58 }
 0x1fc   : > { %v426_v62 = vpop.permute.xlu0 %425 }
 0x1fd   : > { %v417_v60 = vmax.f32 %v605_v59, -32.0 }
 0x1ff   : > { %v418_v61 = vmin.f32 %v417_v60, 31.0 }
 0x201   : > { %v428_v63 = vmul.f32 %v426_v62, %v418_v61 }
 0x203   : > { %429 = vst [vmem:[%s297_s28] sm:$0xff] %v428_v63 }
 0x204 PF: > { %s440_s30 = smul.u32 %s888_s21, %s892_s22  ;;  %s447_s6 = sshll.u32 %s297_s28, 4  ;;  %s1150_s6 = int_to_ptr.vmem [resolvable:$true] %s447_s6 }
 0x205   : > { %s433_s13 = scalar_lea.sflag [#allocation6], %s295_s29  ;;  %s752_s5 = scalar_lea.vmem %s1150_s6, 128 }
 0x206   : > { %s598_s26 = sshll.u32 %s440_s30, 7  ;;  %p753_p13 = scmp.ne.s32.totalorder %s1150_s6, %s752_s5 }
 0x207   : > { %s445_s9 = scalar_lea.hbm %s1235_s3, %s598_s26  ;;  %p1259_p1 = scmp.ne.s32.totalorder %s1252_s11, 0 }
 0x208   : > { %s909_s21 = smov [#allocation7]  }
 0x209   : > { %p754_p8 = pnand %p753_p13, %p1259_p1  ;;  %s756_s22 = sshll.u32 %s909_s21, 4  ;;  %s757_s22 = int_to_ptr.vmem [resolvable:$false] %s756_s22 }
 0x20a   : > { %s758_s28 = scalar_lea.vmem %s757_s22, 256  ;;  %p759_p5 = scmp.lt.s32.totalorder %s1150_s6, %s757_s22 }
 0x20b   : > { %p755_p10 = pneg %p754_p8  ;;  %p760_p0 = scmp.lt.s32.totalorder %s758_s28, %s752_s5 }
 0x20d   : > { %p761_p4 = por %p760_p0, %p759_p5 }
 0x20f   : > { %p762_p2 = pnand %p761_p4, %p755_p10 }
 0x211   : > { %765 = shalt.err (!%p762_p2)
}
 0x212   : > { %s766_s12 = scalar_lea.hbm %s445_s9, 128  ;;  %s770_s14 = scalar_lea.hbm %s1235_s3, 384 }
 0x213   : > { %p767_p6 = scmp.ne.s32.totalorder %s445_s9, %s766_s12  ;;  %p771_p7 = scmp.lt.u32.totalorder %s445_s9, %s1235_s3 }
 0x214   : > { %p772_p12 = scmp.lt.u32.totalorder %s770_s14, %s766_s12  ;;  %p774_p13 = scmp.lt.u32.totalorder %s766_s12, %s445_s9 }
 0x215   : > { %p768_p9 = pnand %p767_p6, %p1259_p1 }
 0x216   : > { %p773_p3 = por %p772_p12, %p771_p7 }
 0x217   : > { %p769_p11 = pneg %p768_p9 }
 0x218   : > { %p775_p8 = por %p774_p13, %p773_p3 }
 0x21a   : > { %p776_p10 = pnand %p775_p8, %p769_p11 }
 0x21c   : > { %779 = shalt.err (!%p776_p10)
}
 0x21d   : > { %608 = dma.vmem_to_hbm [thread:$0]  (%p1259_p1), %s1150_s6, 128, %s445_s9, %s433_s13  }
 0x21e   : > { %s910_s26 = smov [#allocation8]   ;;  %p1260_p0 = scmp.ne.s32.totalorder %s1251_s10, 0 }
 0x21f   : > { %s458_s18 = sshll.u32 %s910_s26, 4  ;;  %s459_s18 = int_to_ptr.vmem [resolvable:$true] %s458_s18 }
 0x220   : > { %s780_s7 = scalar_lea.vmem %s459_s18, 16  ;;  %s786_s5 = scalar_lea.vmem %s459_s18, 32 }
 0x221   : > { %p781_p5 = scmp.ne.s32.totalorder %s459_s18, %s780_s7  ;;  %p787_p6 = scmp.lt.s32.totalorder %s459_s18, %s459_s18 }
 0x222   : > { %p788_p9 = scmp.lt.s32.totalorder %s786_s5, %s780_s7 }
 0x223   : > { %p782_p4 = pnand %p781_p5, %p1260_p0 }
 0x224   : > { %p789_p7 = por %p788_p9, %p787_p6 }
 0x225   : > { %p783_p2 = pneg %p782_p4 }
 0x227   : > { %p790_p12 = pnand %p789_p7, %p783_p2 }
 0x229   : > { %793 = shalt.err (!%p790_p12)
}
 0x22a   : > { %s1261_s11 = sld [smem:[#allocation17_spill]] }
 0x230   : > { %s794_s28 = scalar_lea.hbm %s1261_s11, 16 }
 0x231   : > { %p795_p1 = scmp.ne.s32.totalorder %s1261_s11, %s794_s28  ;;  %p800_p13 = scmp.lt.u32.totalorder %s794_s28, %s1261_s11 }
 0x233   : > { %p796_p11 = pnand %p795_p1, %p1260_p0 }
 0x235   : > { %p797_p3 = pneg %p796_p11 }
 0x237   : > { %p802_p8 = pnand %p800_p13, %p797_p3 }
 0x239   : > { %805 = shalt.err (!%p802_p8)
}
 0x23a   : > { %610 = dma.vmem_to_hbm [thread:$0]  (%p1260_p0), %s459_s18, 16, %s1261_s11, [#allocation9]  }
 0x23b   : > { %855 = dma.done.wait (%p1260_p0), [#allocation9], 16  }
 0x23c   : > { %857 = vsyncadd (%p1260_p0), [#allocation9], 4294967280 }
 0x23d PF: > { %p625_p10 = scmp.ge.s32.totalorder %s904_s25, 2  ;;  %s474_s14 = sand.u32 1, %s864_s15  }
 0x23e   : > { %p1262_p5 = scmp.ne.s32.totalorder %s1254_s27, 0  ;;  %s475_s8 = scalar_lea.sflag [#allocation6], %s474_s14 }
 0x240   : > { %p619_p4 = pnand %p625_p10, %p1262_p5 }
 0x242   : > { %859 = dma.done.wait (!%p619_p4), %s475_s8, 128  }
 0x243   : > { %861 = vsyncadd (!%p619_p4), %s475_s8, 4294967168  ;;  %s22_s25 = sadd.s32 1, %s904_s25   ;;  %s1263_s22 = sld [smem:[#allocation13_spill]] }
 0x244   : > { %p19_p2 = scmp.ge.s32.totalorder %s22_s25, 8   ;;  %s1264_s10 = sld [smem:[#allocation14_spill]] }
 0x245   : > { %s1265_s30 = sld [smem:[#allocation15_spill]]  ;;  %s1266_s15 = smov %s868_s16 }
 0x246   : > { %s1267_s16 = smov %s872_s17  ;;  %s1268_s17 = smov %s1042_s24 }
 0x247   : > { %s1269_s18 = smov %s880_s19  ;;  %s1270_s19 = smov %s884_s20 }
 0x248   : > { %s1271_s20 = smov %s1039_s4  ;;  %s1272_s21 = smov %s896_s23 }
 0x249   :  { %21 = sbr.rel (!%p19_p2) target bundleno = 13 (0xd), region = 105 }
 0x24a   : > { %s1273_s23 = smov %s1264_s10 }
 0x24b   : > { %s1274_s24 = smov %s1265_s30 }
 0x250   :  { %480 = vsyncpa [#allocation5], 1 }
 0x251   :  { %482 = vsyncpa [#allocation5 + $0x1], 1 }
 0x252   :  { %483 = vsyncpa [#allocation6], 1 }
 0x253   :  { %485 = vsyncpa [#allocation6 + $0x1], 1 }
 0x254   :  { %486 = vsyncpa [#allocation9], 1 }

</bundles_post_ra>
